<compile_context>
chip_gen: v5e
topology: v5e:2x2
jax: 0.10.0
libtpu: 0.0.40
codegen_flags: <defaults>
</compile_context>

<pallas_src>
import jax
import jax.numpy as jnp
import numpy as np
from jax.experimental import pallas as pl
from jax.experimental.pallas import tpu as pltpu

BN_EPS = 1e-5


# ----------------------------- Pallas kernel ------------------------------- #

def _basic_block_kernel(xe_ref, xo_ref, w1_ref, s1_ref, b1_ref,
                        w2_ref, s2_ref, b2_ref, o_ref,
                        xcat, pscr, x2cat):
    """Fused conv1+BN1+ReLU -> maxpool2x2 -> conv2+BN2+ReLU for one image.

    xe_ref/xo_ref : (1, Hq+1, W*Cin)  even / odd rows of the vertically padded,
                                      lane-packed input image
    w1_ref        : (3*W*Cin, W*C1)   block-banded conv1 weight, output columns
                                      permuted even-w-first (see wrapper)
    s1_ref,b1_ref : (1, W*C1)         folded BN1 scale / bias, lane-packed
    w2_ref        : (3*Wq*C1, Wq*C2)  block-banded conv2 weight (natural order)
    s2_ref,b2_ref : (1, Wq*C2)
    o_ref         : (1, Hq, Wq*C2)
    xcat          : VMEM (2*Hq, 3*W*Cin)   conv1 contraction assembly
    pscr          : VMEM (Hq+2, Wq*C1)     pooled map + vertical halo
    x2cat         : VMEM (Hq, 3*Wq*C1)     conv2 contraction assembly
    """
    Hq = o_ref.shape[1]                 # pooled rows
    WCin = xe_ref.shape[2]              # W * Cin
    WC1 = w1_ref.shape[1]               # W * C1  (lane-dense: 128 for the toy shape)
    WqC1 = pscr.shape[1]                # Wq * C1

    xe = xe_ref[0]                      # (Hq+1, W*Cin): padded rows 0,2,...,H
    xo = xo_ref[0]                      # (Hq+1, W*Cin): padded rows 1,3,...,H+1

    # ---- conv1 as ONE matmul (K = 3*W*Cin) --------------------------------
    # xcat rows [0:Hq]  -> even conv1 output rows (h = 2i): padded rows 2i, 2i+1, 2i+2
    # xcat rows [Hq:2Hq]-> odd  conv1 output rows (h = 2i+1): padded rows 2i+1,2i+2,2i+3
    xcat[0:Hq,        0 * WCin:1 * WCin] = xe[0:Hq]
    xcat[0:Hq,        1 * WCin:2 * WCin] = xo[0:Hq]
    xcat[0:Hq,        2 * WCin:3 * WCin] = xe[1:Hq + 1]
    xcat[Hq:2 * Hq,   0 * WCin:1 * WCin] = xo[0:Hq]
    xcat[Hq:2 * Hq,   1 * WCin:2 * WCin] = xe[1:Hq + 1]
    xcat[Hq:2 * Hq,   2 * WCin:3 * WCin] = xo[1:Hq + 1]

    y = jnp.dot(xcat[...], w1_ref[...], preferred_element_type=jnp.float32)
    y = jnp.maximum(y * s1_ref[...] + b1_ref[...], 0.0)        # BN1 (folded) + ReLU

    # ---- 2x2 / stride-2 max pool: two aligned half-split maxes -------------
    v = jnp.maximum(y[0:Hq, :], y[Hq:2 * Hq, :])        # vertical: even vs odd rows
    p = jnp.maximum(v[:, 0:WqC1], v[:, WqC1:WC1])       # horizontal: even vs odd cols

    # ---- conv2 on the pooled map (kept entirely in VMEM) -------------------
    pscr[...] = jnp.zeros_like(pscr)                    # zero vertical halo rows
    pscr[1:Hq + 1, :] = p
    x2cat[:, 0 * WqC1:1 * WqC1] = pscr[0:Hq, :]
    x2cat[:, 1 * WqC1:2 * WqC1] = pscr[1:Hq + 1, :]
    x2cat[:, 2 * WqC1:3 * WqC1] = pscr[2:Hq + 2, :]

    z = jnp.dot(x2cat[...], w2_ref[...], preferred_element_type=jnp.float32)
    z = jnp.maximum(z * s2_ref[...] + b2_ref[...], 0.0)        # BN2 (folded) + ReLU
    o_ref[0] = z.astype(o_ref.dtype)


# ------------------------------ wrappers ----------------------------------- #

def _fold_bn(gamma, beta, mean, var, eps=BN_EPS):
    scale = gamma * jax.lax.rsqrt(var + eps)
    bias = beta - mean * scale
    return scale, bias


def _band_weight(w_hwio, w_spatial, out_perm=None):
    """3x3 conv weight (3,3,Cin,Cout) -> block-banded (3*W*Cin, W*Cout) matrix.

    Row index  = dy*(W*Cin) + w_in*Cin + ci   (matches the in-kernel xcat layout)
    Col index  = pos(w_out)*Cout + co         (pos = out_perm position if given)
    Entry      = w[dy, w_in - w_out + 1, ci, co] when that kx is in [0,3), else 0,
    which also implements the horizontal zero-padding of the conv.
    Built with exact (mask-select) placements -- no arithmetic on the weights.
    """
    kh, kw, cin, cout = w_hwio.shape
    wi = np.arange(w_spatial)[:, None]          # input column
    wo = np.arange(w_spatial)[None, :]          # output column
    band = jnp.zeros((kh, w_spatial, cin, w_spatial, cout), w_hwio.dtype)
    for kx in range(kw):
        mask = jnp.asarray(wi == wo + kx - 1)                      # (W, W), disjoint per kx
        tap = w_hwio[:, kx, :, :]                                  # (3, Cin, Cout)
        band = band + jnp.where(mask[None, :, None, :, None],
                                tap[:, None, :, None, :], 0.0)
    if out_perm is not None:
        band = band[:, :, :, out_perm, :]
    return band.reshape(kh * w_spatial * cin, w_spatial * cout)


@jax.jit
def basic_block_forward(x_nchw, params):
    """Pallas implementation of BasicBlock.forward. Input/output are NCHW."""
    x = jnp.transpose(x_nchw, (0, 2, 3, 1))                 # NCHW -> NHWC
    n, h, w, cin = x.shape
    c1 = params["w1"].shape[-1]
    c2 = params["w2"].shape[-1]
    assert h % 2 == 0 and w % 2 == 0, "even spatial dims expected (MaxPool 2x2)"
    hq, wq = h // 2, w // 2

    # lane-pack channels, add 1-row vertical halo, deal even/odd rows (all ~1x traffic)
    xp = jnp.pad(x.reshape(n, h, w * cin), ((0, 0), (1, 1), (0, 0)))   # (N, H+2, W*Cin)
    xe = xp[:, 0::2, :]                                                # (N, Hq+1, W*Cin)
    xo = xp[:, 1::2, :]                                                # (N, Hq+1, W*Cin)

    # folded eval-mode BatchNorm
    s1, b1 = _fold_bn(params["gamma1"], params["beta1"], params["mean1"], params["var1"])
    s2, b2 = _fold_bn(params["gamma2"], params["beta2"], params["mean2"], params["var2"])

    # banded conv weights; conv1 output columns emitted even-w-first so the horizontal
    # pool in the kernel is an aligned lane half-split.
    perm1 = np.concatenate([np.arange(0, w, 2), np.arange(1, w, 2)])
    w1b = _band_weight(params["w1"], w, out_perm=perm1)        # (3*W*Cin, W*C1)
    w2b = _band_weight(params["w2"], wq)                       # (3*Wq*C1, Wq*C2)

    # lane-packed BN scale/bias (per-channel only -> tiling is permutation-invariant)
    s1p = jnp.tile(s1, w)[None, :]                             # (1, W*C1)
    b1p = jnp.tile(b1, w)[None, :]
    s2p = jnp.tile(s2, wq)[None, :]                            # (1, Wq*C2)
    b2p = jnp.tile(b2, wq)[None, :]

    out = pl.pallas_call(
        _basic_block_kernel,
        out_shape=jax.ShapeDtypeStruct((n, hq, wq * c2), jnp.float32),
        grid_spec=pltpu.PrefetchScalarGridSpec(
            num_scalar_prefetch=0,
            grid=(n,),
            in_specs=[
                pl.BlockSpec((1, hq + 1, w * cin), lambda i: (i, 0, 0)),   # xe
                pl.BlockSpec((1, hq + 1, w * cin), lambda i: (i, 0, 0)),   # xo
                pl.BlockSpec((3 * w * cin, w * c1), lambda i: (0, 0)),     # w1 band
                pl.BlockSpec((1, w * c1), lambda i: (0, 0)),               # bn1 scale
                pl.BlockSpec((1, w * c1), lambda i: (0, 0)),               # bn1 bias
                pl.BlockSpec((3 * wq * c1, wq * c2), lambda i: (0, 0)),    # w2 band
                pl.BlockSpec((1, wq * c2), lambda i: (0, 0)),              # bn2 scale
                pl.BlockSpec((1, wq * c2), lambda i: (0, 0)),              # bn2 bias
            ],
            out_specs=pl.BlockSpec((1, hq, wq * c2), lambda i: (i, 0, 0)),
            scratch_shapes=[
                pltpu.VMEM((2 * hq, 3 * w * cin), jnp.float32),   # conv1 K-assembly
                pltpu.VMEM((hq + 2, wq * c1), jnp.float32),       # pooled map + halo
                pltpu.VMEM((hq, 3 * wq * c1), jnp.float32),       # conv2 K-assembly
            ],
        ),
        compiler_params=pltpu.CompilerParams(
            dimension_semantics=("parallel",),
            vmem_limit_bytes=32 * 1024 * 1024,
        ),
    )(xe, xo, w1b, s1p, b1p, w2b, s2p, b2p)

    return jnp.transpose(out.reshape(n, hq, wq, c2), (0, 3, 1, 2))   # -> NCHW


# ----------------------------- pure-JAX reference --------------------------- #

def reference_forward(x_nchw, params, eps=BN_EPS):
    x = jnp.transpose(x_nchw, (0, 2, 3, 1))

    def conv(v, w):
        return jax.lax.conv_general_dilated(
            v, w, window_strides=(1, 1), padding="SAME",
            dimension_numbers=("NHWC", "HWIO", "NHWC"))

    def bn(v, g, b, m, var):
        return (v - m) * jax.lax.rsqrt(var + eps) * g + b

    y = jax.nn.relu(bn(conv(x, params["w1"]), params["gamma1"],
                       params["beta1"], params["mean1"], params["var1"]))
    y = jax.lax.reduce_window(y, -jnp.inf, jax.lax.max,
                              (1, 2, 2, 1), (1, 2, 2, 1), "VALID")
    y = jax.nn.relu(bn(conv(y, params["w2"]), params["gamma2"],
                       params["beta2"], params["mean2"], params["var2"]))
    return jnp.transpose(y, (0, 3, 1, 2))


# ---------------------------------- main ------------------------------------ #

if __name__ == "__main__":
    inplanes, planes = 4, 8
    N, H, W = 2, 16, 16

    key = jax.random.PRNGKey(0)
    kx, kw1, kw2, kg1, kb1, km1, kv1, kg2, kb2, km2, kv2 = jax.random.split(key, 11)

    x = jax.random.normal(kx, (N, inplanes, H, W), jnp.float32)

    params = {
        # conv weights stored HWIO (3, 3, Cin, Cout); no conv bias (bias=False)
        "w1": 0.2 * jax.random.normal(kw1, (3, 3, inplanes, planes), jnp.float32),
        "w2": 0.2 * jax.random.normal(kw2, (3, 3, planes, planes), jnp.float32),
        # BatchNorm (eval-mode) parameters / running stats
        "gamma1": 1.0 + 0.1 * jax.random.normal(kg1, (planes,), jnp.float32),
        "beta1": 0.1 * jax.random.normal(kb1, (planes,), jnp.float32),
        "mean1": 0.1 * jax.random.normal(km1, (planes,), jnp.float32),
        "var1": jax.random.uniform(kv1, (planes,), jnp.float32, 0.5, 1.5),
        "gamma2": 1.0 + 0.1 * jax.random.normal(kg2, (planes,), jnp.float32),
        "beta2": 0.1 * jax.random.normal(kb2, (planes,), jnp.float32),
        "mean2": 0.1 * jax.random.normal(km2, (planes,), jnp.float32),
        "var2": jax.random.uniform(kv2, (planes,), jnp.float32, 0.5, 1.5),
    }

    out = basic_block_forward(x, params)
    out = jax.block_until_ready(out)

    ref = reference_forward(x, params)
    ref = jax.block_until_ready(ref)

    assert out.shape == (N, planes, H // 2, W // 2), out.shape
    max_err = float(jnp.max(jnp.abs(out - ref)))
    if max_err > 1e-3:
        raise AssertionError(f"mismatch vs reference, max abs err = {max_err}")

    print("KERNEL_OK")
</pallas_src>

<mosaic_0001>
module attributes {stable_mosaic.version = 11 : i64} {
  func.func @_basic_block_kernel(%arg0: i32, %arg1: memref<1x9x64xf32, #tpu.memory_space<vmem>>, %arg2: memref<1x9x64xf32, #tpu.memory_space<vmem>>, %arg3: memref<192x128xf32, #tpu.memory_space<vmem>>, %arg4: memref<1x128xf32, #tpu.memory_space<vmem>>, %arg5: memref<1x128xf32, #tpu.memory_space<vmem>>, %arg6: memref<192x64xf32, #tpu.memory_space<vmem>>, %arg7: memref<1x64xf32, #tpu.memory_space<vmem>>, %arg8: memref<1x64xf32, #tpu.memory_space<vmem>>, %arg9: memref<1x8x64xf32, #tpu.memory_space<vmem>>, %arg10: memref<16x192xf32, #tpu.memory_space<vmem>>, %arg11: memref<10x64xf32, #tpu.memory_space<vmem>>, %arg12: memref<8x192xf32, #tpu.memory_space<vmem>>) attributes {dimension_semantics = [#tpu.dimension_semantics<parallel>], iteration_bounds = array<i64: 2>, scalar_prefetch = 0 : i64, scratch_operands = 3 : i64, tpu.core_type = #tpu.core_type<tc>, window_params = [{transform_indices = @transform_0, window_bounds = array<i64: 1, 9, 64>}, {transform_indices = @transform_1, window_bounds = array<i64: 1, 9, 64>}, {pipeline_mode = #tpu.pipeline_mode<synchronous>, transform_indices = @transform_2, window_bounds = array<i64: 192, 128>}, {pipeline_mode = #tpu.pipeline_mode<synchronous>, transform_indices = @transform_3, window_bounds = array<i64: 1, 128>}, {pipeline_mode = #tpu.pipeline_mode<synchronous>, transform_indices = @transform_4, window_bounds = array<i64: 1, 128>}, {pipeline_mode = #tpu.pipeline_mode<synchronous>, transform_indices = @transform_5, window_bounds = array<i64: 192, 64>}, {pipeline_mode = #tpu.pipeline_mode<synchronous>, transform_indices = @transform_6, window_bounds = array<i64: 1, 64>}, {pipeline_mode = #tpu.pipeline_mode<synchronous>, transform_indices = @transform_7, window_bounds = array<i64: 1, 64>}, {transform_indices = @transform_8, window_bounds = array<i64: 1, 8, 64>}]} {
    %c0 = arith.constant 0 : index
    %c0_0 = arith.constant 0 : index
    %c0_1 = arith.constant 0 : index
    %0 = vector.load %arg1[%c0, %c0_0, %c0_1] : memref<1x9x64xf32, #tpu.memory_space<vmem>>, vector<1x9x64xf32>
    %1 = vector.shape_cast %0 : vector<1x9x64xf32> to vector<9x64xf32>
    %c0_2 = arith.constant 0 : index
    %c0_3 = arith.constant 0 : index
    %c0_4 = arith.constant 0 : index
    %2 = vector.load %arg2[%c0_2, %c0_3, %c0_4] : memref<1x9x64xf32, #tpu.memory_space<vmem>>, vector<1x9x64xf32>
    %3 = vector.shape_cast %2 : vector<1x9x64xf32> to vector<9x64xf32>
    %4 = vector.extract_strided_slice %1 {offsets = [0, 0], sizes = [8, 64], strides = [1, 1]} : vector<9x64xf32> to vector<8x64xf32>
    %c0_5 = arith.constant 0 : index
    %c0_6 = arith.constant 0 : index
    %5 = vector.load %arg10[%c0_5, %c0_6] : memref<16x192xf32, #tpu.memory_space<vmem>>, vector<8x64xf32>
    tpu.vector_store %arg10[%c0_5, %c0_6], %4 {strides = array<i32>} : memref<16x192xf32, #tpu.memory_space<vmem>>, vector<8x64xf32>,
    %6 = vector.extract_strided_slice %3 {offsets = [0, 0], sizes = [8, 64], strides = [1, 1]} : vector<9x64xf32> to vector<8x64xf32>
    %c0_7 = arith.constant 0 : index
    %c64 = arith.constant 64 : index
    %7 = vector.load %arg10[%c0_7, %c64] : memref<16x192xf32, #tpu.memory_space<vmem>>, vector<8x64xf32>
    tpu.vector_store %arg10[%c0_7, %c64], %6 {strides = array<i32>} : memref<16x192xf32, #tpu.memory_space<vmem>>, vector<8x64xf32>,
    %8 = vector.extract_strided_slice %1 {offsets = [1, 0], sizes = [8, 64], strides = [1, 1]} : vector<9x64xf32> to vector<8x64xf32>
    %c0_8 = arith.constant 0 : index
    %c128 = arith.constant 128 : index
    %9 = vector.load %arg10[%c0_8, %c128] : memref<16x192xf32, #tpu.memory_space<vmem>>, vector<8x64xf32>
    tpu.vector_store %arg10[%c0_8, %c128], %8 {strides = array<i32>} : memref<16x192xf32, #tpu.memory_space<vmem>>, vector<8x64xf32>,
    %10 = vector.extract_strided_slice %3 {offsets = [0, 0], sizes = [8, 64], strides = [1, 1]} : vector<9x64xf32> to vector<8x64xf32>
    %c8 = arith.constant 8 : index
    %c0_9 = arith.constant 0 : index
    %11 = vector.load %arg10[%c8, %c0_9] : memref<16x192xf32, #tpu.memory_space<vmem>>, vector<8x64xf32>
    tpu.vector_store %arg10[%c8, %c0_9], %10 {strides = array<i32>} : memref<16x192xf32, #tpu.memory_space<vmem>>, vector<8x64xf32>,
    %12 = vector.extract_strided_slice %1 {offsets = [1, 0], sizes = [8, 64], strides = [1, 1]} : vector<9x64xf32> to vector<8x64xf32>
    %c8_10 = arith.constant 8 : index
    %c64_11 = arith.constant 64 : index
    %13 = vector.load %arg10[%c8_10, %c64_11] : memref<16x192xf32, #tpu.memory_space<vmem>>, vector<8x64xf32>
    tpu.vector_store %arg10[%c8_10, %c64_11], %12 {strides = array<i32>} : memref<16x192xf32, #tpu.memory_space<vmem>>, vector<8x64xf32>,
    %14 = vector.extract_strided_slice %3 {offsets = [1, 0], sizes = [8, 64], strides = [1, 1]} : vector<9x64xf32> to vector<8x64xf32>
    %c8_12 = arith.constant 8 : index
    %c128_13 = arith.constant 128 : index
    %15 = vector.load %arg10[%c8_12, %c128_13] : memref<16x192xf32, #tpu.memory_space<vmem>>, vector<8x64xf32>
    tpu.vector_store %arg10[%c8_12, %c128_13], %14 {strides = array<i32>} : memref<16x192xf32, #tpu.memory_space<vmem>>, vector<8x64xf32>,
    %c0_14 = arith.constant 0 : index
    %c0_15 = arith.constant 0 : index
    %16 = vector.load %arg10[%c0_14, %c0_15] : memref<16x192xf32, #tpu.memory_space<vmem>>, vector<16x192xf32>
    %c0_16 = arith.constant 0 : index
    %c0_17 = arith.constant 0 : index
    %17 = vector.load %arg3[%c0_16, %c0_17] : memref<192x128xf32, #tpu.memory_space<vmem>>, vector<192x128xf32>
    %cst = arith.constant dense<0.000000e+00> : vector<16x128xf32>
    %18 = tpu.matmul %16, %17, %cst {dimension_numbers = #tpu.dot_dimension_numbers<[1], [0], [0], [1], [0, 0, 1, 1], [], []>} : vector<16x192xf32>, vector<192x128xf32>, vector<16x128xf32> -> vector<16x128xf32>
    %c0_18 = arith.constant 0 : index
    %c0_19 = arith.constant 0 : index
    %19 = vector.load %arg4[%c0_18, %c0_19] : memref<1x128xf32, #tpu.memory_space<vmem>>, vector<1x128xf32>
    %20 = vector.broadcast %19 : vector<1x128xf32> to vector<16x128xf32>
    %21 = arith.mulf %18, %20 : vector<16x128xf32>
    %c0_20 = arith.constant 0 : index
    %c0_21 = arith.constant 0 : index
    %22 = vector.load %arg5[%c0_20, %c0_21] : memref<1x128xf32, #tpu.memory_space<vmem>>, vector<1x128xf32>
    %23 = vector.broadcast %22 : vector<1x128xf32> to vector<16x128xf32>
    %24 = arith.addf %21, %23 : vector<16x128xf32>
    %cst_22 = arith.constant 0.000000e+00 : f32
    %25 = vector.broadcast %cst_22 : f32 to vector<16x128xf32>
    %26 = arith.maximumf %24, %25 : vector<16x128xf32>
    %27 = vector.extract_strided_slice %26 {offsets = [0, 0], sizes = [8, 128], strides = [1, 1]} : vector<16x128xf32> to vector<8x128xf32>
    %28 = vector.extract_strided_slice %26 {offsets = [8, 0], sizes = [8, 128], strides = [1, 1]} : vector<16x128xf32> to vector<8x128xf32>
    %29 = arith.maximumf %27, %28 : vector<8x128xf32>
    %30 = vector.extract_strided_slice %29 {offsets = [0, 0], sizes = [8, 64], strides = [1, 1]} : vector<8x128xf32> to vector<8x64xf32>
    %31 = vector.extract_strided_slice %29 {offsets = [0, 64], sizes = [8, 64], strides = [1, 1]} : vector<8x128xf32> to vector<8x64xf32>
    %32 = arith.maximumf %30, %31 : vector<8x64xf32>
    %cst_23 = arith.constant 0.000000e+00 : f32
    %33 = vector.broadcast %cst_23 : f32 to vector<10x64xf32>
    %c0_24 = arith.constant 0 : index
    %c0_25 = arith.constant 0 : index
    %34 = vector.load %arg11[%c0_24, %c0_25] : memref<10x64xf32, #tpu.memory_space<vmem>>, vector<10x64xf32>
    tpu.vector_store %arg11[%c0_24, %c0_25], %33 {strides = array<i32>} : memref<10x64xf32, #tpu.memory_space<vmem>>, vector<10x64xf32>,
    %c1 = arith.constant 1 : index
    %c0_26 = arith.constant 0 : index
    %35 = vector.load %arg11[%c1, %c0_26] : memref<10x64xf32, #tpu.memory_space<vmem>>, vector<8x64xf32>
    tpu.vector_store %arg11[%c1, %c0_26], %32 {strides = array<i32>} : memref<10x64xf32, #tpu.memory_space<vmem>>, vector<8x64xf32>,
    %c0_27 = arith.constant 0 : index
    %c0_28 = arith.constant 0 : index
    %36 = vector.load %arg11[%c0_27, %c0_28] : memref<10x64xf32, #tpu.memory_space<vmem>>, vector<8x64xf32>
    %c0_29 = arith.constant 0 : index
    %c0_30 = arith.constant 0 : index
    %37 = vector.load %arg12[%c0_29, %c0_30] : memref<8x192xf32, #tpu.memory_space<vmem>>, vector<8x64xf32>
    tpu.vector_store %arg12[%c0_29, %c0_30], %36 {strides = array<i32>} : memref<8x192xf32, #tpu.memory_space<vmem>>, vector<8x64xf32>,
    %c1_31 = arith.constant 1 : index
    %c0_32 = arith.constant 0 : index
    %38 = vector.load %arg11[%c1_31, %c0_32] : memref<10x64xf32, #tpu.memory_space<vmem>>, vector<8x64xf32>
    %c0_33 = arith.constant 0 : index
    %c64_34 = arith.constant 64 : index
    %39 = vector.load %arg12[%c0_33, %c64_34] : memref<8x192xf32, #tpu.memory_space<vmem>>, vector<8x64xf32>
    tpu.vector_store %arg12[%c0_33, %c64_34], %38 {strides = array<i32>} : memref<8x192xf32, #tpu.memory_space<vmem>>, vector<8x64xf32>,
    %c2 = arith.constant 2 : index
    %c0_35 = arith.constant 0 : index
    %40 = vector.load %arg11[%c2, %c0_35] : memref<10x64xf32, #tpu.memory_space<vmem>>, vector<8x64xf32>
    %c0_36 = arith.constant 0 : index
    %c128_37 = arith.constant 128 : index
    %41 = vector.load %arg12[%c0_36, %c128_37] : memref<8x192xf32, #tpu.memory_space<vmem>>, vector<8x64xf32>
    tpu.vector_store %arg12[%c0_36, %c128_37], %40 {strides = array<i32>} : memref<8x192xf32, #tpu.memory_space<vmem>>, vector<8x64xf32>,
    %c0_38 = arith.constant 0 : index
    %c0_39 = arith.constant 0 : index
    %42 = vector.load %arg12[%c0_38, %c0_39] : memref<8x192xf32, #tpu.memory_space<vmem>>, vector<8x192xf32>
    %c0_40 = arith.constant 0 : index
    %c0_41 = arith.constant 0 : index
    %43 = vector.load %arg6[%c0_40, %c0_41] : memref<192x64xf32, #tpu.memory_space<vmem>>, vector<192x64xf32>
    %cst_42 = arith.constant dense<0.000000e+00> : vector<8x64xf32>
    %44 = tpu.matmul %42, %43, %cst_42 {dimension_numbers = #tpu.dot_dimension_numbers<[1], [0], [0], [1], [0, 0, 1, 1], [], []>} : vector<8x192xf32>, vector<192x64xf32>, vector<8x64xf32> -> vector<8x64xf32>
    %c0_43 = arith.constant 0 : index
    %c0_44 = arith.constant 0 : index
    %45 = vector.load %arg7[%c0_43, %c0_44] : memref<1x64xf32, #tpu.memory_space<vmem>>, vector<1x64xf32>
    %46 = vector.broadcast %45 : vector<1x64xf32> to vector<8x64xf32>
    %47 = arith.mulf %44, %46 : vector<8x64xf32>
    %c0_45 = arith.constant 0 : index
    %c0_46 = arith.constant 0 : index
    %48 = vector.load %arg8[%c0_45, %c0_46] : memref<1x64xf32, #tpu.memory_space<vmem>>, vector<1x64xf32>
    %49 = vector.broadcast %48 : vector<1x64xf32> to vector<8x64xf32>
    %50 = arith.addf %47, %49 : vector<8x64xf32>
    %cst_47 = arith.constant 0.000000e+00 : f32
    %51 = vector.broadcast %cst_47 : f32 to vector<8x64xf32>
    %52 = arith.maximumf %50, %51 : vector<8x64xf32>
    %c0_48 = arith.constant 0 : index
    %c0_49 = arith.constant 0 : index
    %c0_50 = arith.constant 0 : index
    %53 = vector.load %arg9[%c0_48, %c0_49, %c0_50] : memref<1x8x64xf32, #tpu.memory_space<vmem>>, vector<1x8x64xf32>
    %54 = vector.shape_cast %53 : vector<1x8x64xf32> to vector<8x64xf32>
    %55 = vector.shape_cast %52 : vector<8x64xf32> to vector<1x8x64xf32>
    tpu.vector_store %arg9[%c0_48, %c0_49, %c0_50], %55 {strides = array<i32>} : memref<1x8x64xf32, #tpu.memory_space<vmem>>, vector<1x8x64xf32>,
    return
  }
  func.func @transform_0(%arg0: i32) -> (i32, i32, i32) {
    %c0_i32 = arith.constant 0 : i32
    %c0_i32_0 = arith.constant 0 : i32
    %c0_i32_1 = arith.constant 0 : i32
    return %arg0, %c0_i32, %c0_i32_0 : i32, i32, i32
  }
  func.func @transform_1(%arg0: i32) -> (i32, i32, i32) {
    %c0_i32 = arith.constant 0 : i32
    %c0_i32_0 = arith.constant 0 : i32
    %c0_i32_1 = arith.constant 0 : i32
    return %arg0, %c0_i32, %c0_i32_0 : i32, i32, i32
  }
  func.func @transform_2(%arg0: i32) -> (i32, i32) {
    %c0_i32 = arith.constant 0 : i32
    %c0_i32_0 = arith.constant 0 : i32
    %c0_i32_1 = arith.constant 0 : i32
    return %c0_i32, %c0_i32_0 : i32, i32
  }
  func.func @transform_3(%arg0: i32) -> (i32, i32) {
    %c0_i32 = arith.constant 0 : i32
    %c0_i32_0 = arith.constant 0 : i32
    %c0_i32_1 = arith.constant 0 : i32
    return %c0_i32, %c0_i32_0 : i32, i32
  }
  func.func @transform_4(%arg0: i32) -> (i32, i32) {
    %c0_i32 = arith.constant 0 : i32
    %c0_i32_0 = arith.constant 0 : i32
    %c0_i32_1 = arith.constant 0 : i32
    return %c0_i32, %c0_i32_0 : i32, i32
  }
  func.func @transform_5(%arg0: i32) -> (i32, i32) {
    %c0_i32 = arith.constant 0 : i32
    %c0_i32_0 = arith.constant 0 : i32
    %c0_i32_1 = arith.constant 0 : i32
    return %c0_i32, %c0_i32_0 : i32, i32
  }
  func.func @transform_6(%arg0: i32) -> (i32, i32) {
    %c0_i32 = arith.constant 0 : i32
    %c0_i32_0 = arith.constant 0 : i32
    %c0_i32_1 = arith.constant 0 : i32
    return %c0_i32, %c0_i32_0 : i32, i32
  }
  func.func @transform_7(%arg0: i32) -> (i32, i32) {
    %c0_i32 = arith.constant 0 : i32
    %c0_i32_0 = arith.constant 0 : i32
    %c0_i32_1 = arith.constant 0 : i32
    return %c0_i32, %c0_i32_0 : i32, i32
  }
  func.func @transform_8(%arg0: i32) -> (i32, i32, i32) {
    %c0_i32 = arith.constant 0 : i32
    %c0_i32_0 = arith.constant 0 : i32
    %c0_i32_1 = arith.constant 0 : i32
    return %arg0, %c0_i32, %c0_i32_0 : i32, i32, i32
  }
}

</mosaic_0001>

<bundles_post_ra>
// kernel: tile.23
= control target key start
LH: loop header
LB: loop body
LE: loop exit
PB: predicated region body
PF: predicated region fallthrough
CT: control target
= control target key end

     0   :  { %s28_s0 = inlined_call_operand.vmem [shape: f32[8], index: 0, kind: input, shape index: {}]   ;;  %s29_s1 = inlined_call_operand.vmem [shape: f32[16,8], index: 1, kind: output, shape index: {}]  }
   0x1   :  { %v4_v0 = vld [vmem:[%s28_s0] ss:$0 sm:$0xff] }
   0x2   :  { %5 = vst [vmem:[%s29_s1] sm:$0xff] %v4_v0 }
   0x3   :  { %8 = vst [vmem:[%s29_s1 + $0x8] sm:$0xff] %v4_v0 }

// kernel: tile.33
= control target key start
LH: loop header
LB: loop body
LE: loop exit
PB: predicated region body
PF: predicated region fallthrough
CT: control target
= control target key end

     0   :  { %s22_s0 = inlined_call_operand.vmem [shape: f32[8], index: 0, kind: input, shape index: {}]   ;;  %s23_s1 = inlined_call_operand.vmem [shape: f32[8,8], index: 1, kind: output, shape index: {}]  }
   0x1   :  { %v4_v0 = vld [vmem:[%s22_s0] ss:$0 sm:$0xff] }
   0x2   :  { %5 = vst [vmem:[%s23_s1] sm:$0xff] %v4_v0 }

// kernel: tile.24
= control target key start
LH: loop header
LB: loop body
LE: loop exit
PB: predicated region body
PF: predicated region fallthrough
CT: control target
= control target key end

     0   :  { %s131_s10 = smov 120   ;;  %s132_s11 = smov 104   ;;  %vm3_vm0 = vcmask 64512   ;;  %vm9_vm1 = vcmask 1048512   ;;  %vm15_vm2 = vcmask 982912   ;;  %vm21_vm3 = vcmask 917312   ;;  %s207_s0 = inlined_call_operand.vmem [shape: f32[16,8], index: 0, kind: input, shape index: {}]   ;;  %s208_s1 = inlined_call_operand.vmem [shape: f32[1,128], index: 1, kind: output, shape index: {}]  }
   0x1   :  { %v101_v0 = vld [vmem:[%s207_s0 + $0xf] sm:$0x1]   ;;  %v103_v1 = vld [vmem:[%s207_s0 + $0xd] sm:$0x1]   ;;  %v105_v2 = vld [vmem:[%s207_s0 + $0xb] sm:$0x1]  }
   0x2   :  { %7 = vrot.lane.b32.xlu0 %v101_v0, %s131_s10  ;;  %19 = vrot.lane.b32.xlu1 %v103_v1, %s132_s11  ;;  %s133_s14 = smov 88   ;;  %v102_v3 = vld [vmem:[%s207_s0 + $0xe] sm:$0x1]   ;;  %v104_v4 = vld [vmem:[%s207_s0 + $0xc] sm:$0x1]   ;;  %s134_s19 = smov 112  }
   0x3   :  { %31 = vrot.lane.b32.xlu2 %v105_v2, %s133_s14  ;;  %s135_s20 = smov 96   ;;  %v106_v5 = vld [vmem:[%s207_s0 + $0xa] sm:$0x1]   ;;  %s136_s23 = smov 80   ;;  %v107_v6 = vld [vmem:[%s207_s0 + $0x9] sm:$0x1]  }
   0x4   :  { %v108_v7 = vld [vmem:[%s207_s0 + $0x8] sm:$0x1]   ;;  %s137_s28 = smov 72   ;;  %s138_s29 = smov 64   ;;  %v109_v8 = vld [vmem:[%s207_s0 + $0x7] sm:$0x1]  }
   0x5   :  { %s139_s3 = smov 56   ;;  %v110_v9 = vld [vmem:[%s207_s0 + $0x6] sm:$0x1]   ;;  %v111_v10 = vld [vmem:[%s207_s0 + $0x5] sm:$0x1]   ;;  %s140_s8 = smov 48  }
   0x6   :  { %s141_s9 = smov 40   ;;  %v112_v11 = vld [vmem:[%s207_s0 + $0x4] sm:$0x1]   ;;  %s142_s12 = smov 32   ;;  %v113_v12 = vld [vmem:[%s207_s0 + $0x3] sm:$0x1]  }
   0x7   :  { %v114_v13 = vld [vmem:[%s207_s0 + $0x2] sm:$0x1]   ;;  %s143_s17 = smov 24   ;;  %s144_s18 = smov 16   ;;  %v115_v14 = vld [vmem:[%s207_s0 + $0x1] sm:$0x1]  }
   0x8   :  { %s145_s21 = smov 8   ;;  %v2_v15 = vld [vmem:[%s207_s0] sm:$0x1]   ;;  %vm27_vm4 = vcmask 851712   ;;  %vm33_vm5 = vcmask 786112   ;;  %vm39_vm6 = vcmask 720512  }
   0x9   :  { %4 = vst.msk [vmem:[#allocation0] sm:$0x1] %vm3_vm0, %v2_v15   ;;  %vm45_vm7 = vcmask 654912   ;;  %vm51_vm8 = vcmask 589312   ;;  %vm57_vm9 = vcmask 523712   ;;  %vm63_vm10 = vcmask 458112  }
   0xa   :  { %13 = vrot.lane.b32.xlu0 %v102_v3, %s134_s19  ;;  %25 = vrot.lane.b32.xlu1 %v104_v4, %s135_s20  ;;  %vm69_vm11 = vcmask 392512   ;;  %vm75_vm12 = vcmask 326912   ;;  %vm81_vm13 = vcmask 261312   ;;  %vm87_vm14 = vcmask 195712  }
   0xb   :  { %37 = vrot.lane.b32.xlu2 %v106_v5, %s136_s23  ;;  %vm93_vm15 = vcmask 130112  }
  0x12   :  { %43 = vrot.lane.b32.xlu0 %v107_v6, %s137_s28  ;;  %49 = vrot.lane.b32.xlu1 %v108_v7, %s138_s29 }
  0x13   :  { %55 = vrot.lane.b32.xlu2 %v109_v8, %s139_s3 }
  0x1a   :  { %61 = vrot.lane.b32.xlu0 %v110_v9, %s140_s8  ;;  %67 = vrot.lane.b32.xlu1 %v111_v10, %s141_s9 }
  0x1b   :  { %73 = vrot.lane.b32.xlu2 %v112_v11, %s142_s12 }
  0x22   :  { %79 = vrot.lane.b32.xlu0 %v113_v12, %s143_s17  ;;  %85 = vrot.lane.b32.xlu1 %v114_v13, %s144_s18 }
  0x23   :  { %91 = vrot.lane.b32.xlu2 %v115_v14, %s145_s21 }
  0x5d   :  { %v32_v16 = vpop.permute.xlu2 %31  }
  0x65   :  { %v38_v17 = vpop.permute.xlu2 %37  }
  0x6d   :  { %v56_v18 = vpop.permute.xlu2 %55  }
  0x74   :  { %v8_v19 = vpop.permute.xlu0 %7   ;;  %v20_v20 = vpop.permute.xlu1 %19  }
  0x75   :  { %10 = vst.msk [vmem:[#allocation0] sm:$0x1] %vm9_vm1, %v8_v19   ;;  %v74_v21 = vpop.permute.xlu2 %73  }
  0x7c   :  { %v14_v22 = vpop.permute.xlu0 %13   ;;  %v26_v23 = vpop.permute.xlu1 %25  }
  0x7d   :  { %16 = vst.msk [vmem:[#allocation0] sm:$0x1] %vm15_vm2, %v14_v22   ;;  %v92_v24 = vpop.permute.xlu2 %91  }
  0x7e   :  { %22 = vst.msk [vmem:[#allocation0] sm:$0x1] %vm21_vm3, %v20_v20  }
  0x7f   :  { %28 = vst.msk [vmem:[#allocation0] sm:$0x1] %vm27_vm4, %v26_v23  }
  0x80   :  { %34 = vst.msk [vmem:[#allocation0] sm:$0x1] %vm33_vm5, %v32_v16  }
  0x81   :  { %40 = vst.msk [vmem:[#allocation0] sm:$0x1] %vm39_vm6, %v38_v17  }
  0x84   :  { %v44_v25 = vpop.permute.xlu0 %43   ;;  %v50_v26 = vpop.permute.xlu1 %49  }
  0x85   :  { %46 = vst.msk [vmem:[#allocation0] sm:$0x1] %vm45_vm7, %v44_v25  }
  0x86   :  { %52 = vst.msk [vmem:[#allocation0] sm:$0x1] %vm51_vm8, %v50_v26  }
  0x87   :  { %58 = vst.msk [vmem:[#allocation0] sm:$0x1] %vm57_vm9, %v56_v18  }
  0x8c   :  { %v62_v27 = vpop.permute.xlu0 %61   ;;  %v68_v28 = vpop.permute.xlu1 %67  }
  0x8d   :  { %64 = vst.msk [vmem:[#allocation0] sm:$0x1] %vm63_vm10, %v62_v27  }
  0x8e   :  { %70 = vst.msk [vmem:[#allocation0] sm:$0x1] %vm69_vm11, %v68_v28  }
  0x8f   :  { %76 = vst.msk [vmem:[#allocation0] sm:$0x1] %vm75_vm12, %v74_v21  }
  0x94   :  { %v80_v29 = vpop.permute.xlu0 %79   ;;  %v86_v30 = vpop.permute.xlu1 %85  }
  0x95   :  { %82 = vst.msk [vmem:[#allocation0] sm:$0x1] %vm81_vm13, %v80_v29  }
  0x96   :  { %88 = vst.msk [vmem:[#allocation0] sm:$0x1] %vm87_vm14, %v86_v30  }
  0x97   :  { %94 = vst.msk [vmem:[#allocation0] sm:$0x1] %vm93_vm15, %v92_v24  }
  0x9e   :  { %v97_v31 = vld [vmem:[#allocation0] sm:$0x1] }
  0x9f   :  { %100 = vst [vmem:[%s208_s1] sm:$0x1] %v97_v31 }

// kernel: tile.34
= control target key start
LH: loop header
LB: loop body
LE: loop exit
PB: predicated region body
PF: predicated region fallthrough
CT: control target
= control target key end

     0   :  { %s67_s10 = smov 56   ;;  %s68_s11 = smov 40   ;;  %vm3_vm0 = vcmask 64512   ;;  %vm9_vm1 = vcmask 523712   ;;  %vm15_vm2 = vcmask 458112   ;;  %vm21_vm3 = vcmask 392512   ;;  %s111_s0 = inlined_call_operand.vmem [shape: f32[8,8], index: 0, kind: input, shape index: {}]   ;;  %s112_s1 = inlined_call_operand.vmem [shape: f32[1,64], index: 1, kind: output, shape index: {}]  }
   0x1   :  { %v53_v0 = vld [vmem:[%s111_s0 + $0x7] sm:$0x1]   ;;  %v55_v1 = vld [vmem:[%s111_s0 + $0x5] sm:$0x1]   ;;  %v57_v2 = vld [vmem:[%s111_s0 + $0x3] sm:$0x1]  }
   0x2   :  { %7 = vrot.lane.b32.xlu0 %v53_v0, %s67_s10  ;;  %19 = vrot.lane.b32.xlu1 %v55_v1, %s68_s11  ;;  %s69_s14 = smov 24   ;;  %v54_v3 = vld [vmem:[%s111_s0 + $0x6] sm:$0x1]   ;;  %v56_v4 = vld [vmem:[%s111_s0 + $0x4] sm:$0x1]   ;;  %s70_s21 = smov 48  }
   0x3   :  { %31 = vrot.lane.b32.xlu2 %v57_v2, %s69_s14  ;;  %v58_v5 = vld [vmem:[%s111_s0 + $0x2] sm:$0x1]   ;;  %s71_s22 = smov 32   ;;  %s72_s23 = smov 16   ;;  %v59_v6 = vld [vmem:[%s111_s0 + $0x1] sm:$0x1]  }
   0x4   :  { %s73_s26 = smov 8   ;;  %v2_v7 = vld [vmem:[%s111_s0] sm:$0x1]   ;;  %vm27_vm4 = vcmask 326912   ;;  %vm33_vm5 = vcmask 261312   ;;  %vm39_vm6 = vcmask 195712  }
   0x5   :  { %4 = vst.msk [vmem:[#allocation0] sm:$0x1] %vm3_vm0, %v2_v7   ;;  %vm45_vm7 = vcmask 130112  }
   0xa   :  { %13 = vrot.lane.b32.xlu0 %v54_v3, %s70_s21  ;;  %25 = vrot.lane.b32.xlu1 %v56_v4, %s71_s22 }
   0xb   :  { %37 = vrot.lane.b32.xlu2 %v58_v5, %s72_s23 }
  0x12   :  { %43 = vrot.lane.b32.xlu0 %v59_v6, %s73_s26 }
  0x5d   :  { %v32_v8 = vpop.permute.xlu2 %31  }
  0x65   :  { %v38_v9 = vpop.permute.xlu2 %37  }
  0x74   :  { %v8_v10 = vpop.permute.xlu0 %7   ;;  %v20_v11 = vpop.permute.xlu1 %19  }
  0x75   :  { %10 = vst.msk [vmem:[#allocation0] sm:$0x1] %vm9_vm1, %v8_v10  }
  0x7c   :  { %v14_v12 = vpop.permute.xlu0 %13   ;;  %v26_v13 = vpop.permute.xlu1 %25  }
  0x7d   :  { %16 = vst.msk [vmem:[#allocation0] sm:$0x1] %vm15_vm2, %v14_v12  }
  0x7e   :  { %22 = vst.msk [vmem:[#allocation0] sm:$0x1] %vm21_vm3, %v20_v11  }
  0x7f   :  { %28 = vst.msk [vmem:[#allocation0] sm:$0x1] %vm27_vm4, %v26_v13  }
  0x80   :  { %34 = vst.msk [vmem:[#allocation0] sm:$0x1] %vm33_vm5, %v32_v8  }
  0x81   :  { %40 = vst.msk [vmem:[#allocation0] sm:$0x1] %vm39_vm6, %v38_v9  }
  0x84   :  { %v44_v14 = vpop.permute.xlu0 %43  }
  0x85   :  { %46 = vst.msk [vmem:[#allocation0] sm:$0x1] %vm45_vm7, %v44_v14  }
  0x8c   :  { %v49_v15 = vld [vmem:[#allocation0] sm:$0x1] }
  0x8d   :  { %52 = vst [vmem:[%s112_s1] sm:$0x1] %v49_v15 }

// kernel: basic_block_forward.1
= control target key start
LH: loop header
LB: loop body
LE: loop exit
PB: predicated region body
PF: predicated region fallthrough
CT: control target
= control target key end

     0   :  { %s701_s27 = smov 0   ;;  %s902_s0 = inlined_call_operand.vmem [shape: f32[2,9,64], index: 0, kind: input, shape index: {}]   ;;  %s903_s1 = inlined_call_operand.vmem [shape: f32[2,9,64], index: 1, kind: input, shape index: {}]   ;;  %s904_s2 = inlined_call_operand.vmem [shape: f32[192,128], index: 2, kind: input, shape index: {}]   ;;  %s905_s3 = inlined_call_operand.vmem [shape: f32[1,128], index: 3, kind: input, shape index: {}]   ;;  %s906_s4 = inlined_call_operand.vmem [shape: f32[1,128], index: 4, kind: input, shape index: {}]   ;;  %s907_s5 = inlined_call_operand.vmem [shape: f32[192,64], index: 5, kind: input, shape index: {}]   ;;  %s908_s6 = inlined_call_operand.vmem [shape: f32[1,64], index: 6, kind: input, shape index: {}]   ;;  %s909_s7 = inlined_call_operand.vmem [shape: f32[1,64], index: 7, kind: input, shape index: {}]   ;;  %s910_s8 = inlined_call_operand.vmem [shape: f32[2,8,64], index: 8, kind: output, shape index: {}]  }
   0x1 LB: > { %s615_s28 = sadd.s32 4294967295, %s652_s27   ;;  %p619_p0 = scmp.ge.s32.totalorder %s652_s27, 1  ;;  %s652_s27 = sphi %s701_s27, %s18_s27  }
   0x2   : > { %p272_p1 = scmp.lt.s32.totalorder %s652_s27, 3 }
   0x4   : > { %p273_p2 = pnand %p619_p0, %p272_p1 }
   0x5   : > { %p310_p3 = scmp.lt.s32.totalorder (!%p273_p2), %s615_s28, 1  ;;  %s654_s12 = smov (!%p273_p2), 64  }
   0x6   : > { %276 = sbr.rel (%p273_p2) target bundleno = 671 (0x29f), region = 52 }
   0xb   : > { %v374_v0 = vld [vmem:[%s904_s2 + $0x78] sm:$0xff]  ;;  %v373_v1 = vld [vmem:[%s904_s2 + $0x70] sm:$0xff]  ;;  %s912_s28 = smov (!%p310_p3, %s615_s28), 1  ;;  %v372_v2 = vld [vmem:[%s904_s2 + $0x68] sm:$0xff]  ;;  %vm328_vm0 = vcmask 523264   ;;  %vm338_vm1 = vcmask 1046528  }
   0xc   : > { %389 = vmatpush.msra.mxu0 %v374_v0  ;;  %v382_v3 = vld [vmem:[%s904_s2 + $0xb8] sm:$0xff]  ;;  %s630_s15 = sshll.u32 %s912_s28, 4  ;;  %v371_v4 = vld [vmem:[%s904_s2 + $0x60] sm:$0xff]  ;;  %v381_v6 = vld [vmem:[%s904_s2 + $0xb0] sm:$0xff]  ;;  %vm334_vm2 = vcmask 1048064   ;;  %vm456_vm3 = vcmask 517120  }
   0xd   : > { %v370_v5 = vld [vmem:[%s904_s2 + $0x58] sm:$0xff]  ;;  %420 = vmatpush.msra.mxu1 %v382_v3  ;;  %s319_s24 = scalar_lea.vmem %s903_s1, %s630_s15  ;;  %v380_v7 = vld [vmem:[%s904_s2 + $0xa8] sm:$0xff]  ;;  %v379_v8 = vld [vmem:[%s904_s2 + $0xa0] sm:$0xff]  ;;  %s314_s11 = scalar_lea.vmem %s902_s0, %s630_s15  ;;  %v655_v40 = vmov 0.0  }
   0xe   : > { %390 = vmatpush.msra.mxu0 %v373_v1  ;;  %v326_v9 = vld [vmem:[%s319_s24] sm:$0xff]  ;;  %v327_v10 = vld [vmem:[%s319_s24 + $0x8] sm:$0x1]  ;;  %v369_v17 = vld [vmem:[%s904_s2 + $0x50] sm:$0xff]  ;;  %455 = vst.msk [vmem:[#allocation3] sm:$0xff] %vm328_vm0, %v655_v40  ;;  %s624_s22 = sshll.u32 %s912_s28, 3 }
   0xf   : > { %421 = vmatpush.msra.mxu1 %v381_v6  ;;  %v351_v11 = vrot.slane %v327_v10, 1  ;;  %331 = vrot.lane.b32.xlu0 %v326_v9, %s654_s12  ;;  %v324_v12 = vld [vmem:[%s314_s11] sm:$0xff]  ;;  %v325_v13 = vld [vmem:[%s314_s11 + $0x8] sm:$0x1]  ;;  %v350_v14 = vrot.slane %v326_v9, 1  ;;  %344 = vst.msk [vmem:[#allocation2 + $0x10] sm:$0xff] %vm328_vm0, %v326_v9  ;;  %s323_s25 = scalar_lea.vmem %s910_s8, %s624_s22 }
  0x10   : > { %391 = vmatpush.msra.mxu0 %v372_v2  ;;  %v340_v15 = vrot.slane %v325_v13, 1  ;;  %v339_v16 = vrot.slane %v324_v12, 1  ;;  %329 = vst.msk [vmem:[#allocation2] sm:$0xff] %vm328_vm0, %v324_v12  ;;  %v368_v20 = vld [vmem:[%s904_s2 + $0x48] sm:$0xff]  ;;  %v367_v21 = vld [vmem:[%s904_s2 + $0x40] sm:$0xff]  ;;  %v366_v22 = vld [vmem:[%s904_s2 + $0x38] sm:$0xff] }
  0x11   : > { %422 = vmatpush.msra.mxu1 %v380_v7  ;;  %v352_v18 = vsel %vm338_vm1, %v350_v14, %v351_v11  ;;  %v365_v23 = vld [vmem:[%s904_s2 + $0x30] sm:$0xff]  ;;  %v364_v24 = vld [vmem:[%s904_s2 + $0x28] sm:$0xff]  ;;  %v363_v25 = vld [vmem:[%s904_s2 + $0x20] sm:$0xff]  ;;  %457 = vst.msk [vmem:[#allocation3 + $0x8] sm:$0x3] %vm456_vm3, %v655_v40 }
  0x12   : > { %392 = vmatpush.msra.mxu0 %v371_v4  ;;  %v341_v19 = vsel %vm338_vm1, %v339_v16, %v340_v15  ;;  %354 = vst.msk [vmem:[#allocation2 + $0x18] sm:$0xff] %vm328_vm0, %v352_v18  ;;  %v362_v26 = vld [vmem:[%s904_s2 + $0x18] sm:$0xff]  ;;  %v361_v28 = vld [vmem:[%s904_s2 + $0x10] sm:$0xff]  ;;  %v360_v30 = vld [vmem:[%s904_s2 + $0x8] sm:$0xff] }
  0x13   : > { %423 = vmatpush.msra.mxu1 %v379_v8  ;;  %343 = vst.msk [vmem:[#allocation2 + $0x8] sm:$0xff] %vm328_vm0, %v341_v19  ;;  %v378_v27 = vld [vmem:[%s904_s2 + $0x98] sm:$0xff]  ;;  %v377_v29 = vld [vmem:[%s904_s2 + $0x90] sm:$0xff]  ;;  %v376_v31 = vld [vmem:[%s904_s2 + $0x88] sm:$0xff] }
  0x14   : > { %393 = vmatpush.msra.mxu0 %v370_v5  ;;  %v359_v32 = vld [vmem:[%s904_s2] sm:$0xff]  ;;  %v494_v56 = vld [vmem:[%s907_s5 + $0xb8] sm:$0xff]  ;;  %v493_v57 = vld [vmem:[%s907_s5 + $0xb0] sm:$0xff] }
  0x15   : > { %424 = vmatpush.msra.mxu1 %v378_v27  ;;  %v375_v33 = vld [vmem:[%s904_s2 + $0x80] sm:$0xff]  ;;  %526 = vmatpush.msra.mxu3 %v494_v56  ;;  %v492_v58 = vld [vmem:[%s907_s5 + $0xa8] sm:$0xff]  ;;  %v490_v60 = vld [vmem:[%s907_s5 + $0x98] sm:$0xff] }
  0x16   : > { %394 = vmatpush.msra.mxu0 %v369_v17  ;;  %v642_v44 = vld [vmem:[%s905_s3] ss:$0 sm:$0xff]  ;;  %v489_v61 = vld [vmem:[%s907_s5 + $0x90] sm:$0xff]  ;;  %v488_v62 = vld [vmem:[%s907_s5 + $0x88] sm:$0xff] }
  0x17   : > { %345 = vrot.lane.b32.xlu0 %v341_v19, %s654_s12  ;;  %425 = vmatpush.msra.mxu1 %v377_v29  ;;  %v643_v47 = vld [vmem:[%s906_s4] ss:$0 sm:$0xff]  ;;  %v486_v0 = vld [vmem:[%s907_s5 + $0x78] sm:$0xff]  ;;  %v485_v1 = vld [vmem:[%s907_s5 + $0x70] sm:$0xff] }
  0x18   : > { %395 = vmatpush.msra.mxu0 %v368_v20  ;;  %527 = vmatpush.msra.mxu3 %v493_v57  ;;  %v491_v59 = vld [vmem:[%s907_s5 + $0xa0] sm:$0xff]  ;;  %v484_v2 = vld [vmem:[%s907_s5 + $0x68] sm:$0xff]  ;;  %v482_v4 = vld [vmem:[%s907_s5 + $0x58] sm:$0xff] }
  0x19   : > { %426 = vmatpush.msra.mxu1 %v376_v31  ;;  %v358_v35 = vld [vmem:[#allocation2 + $0x18] sm:$0xff]  ;;  %v487_v63 = vld [vmem:[%s907_s5 + $0x80] sm:$0xff]  ;;  %498 = vmatpush.msra.mxu2 %v486_v0  ;;  %v481_v5 = vld [vmem:[%s907_s5 + $0x50] sm:$0xff] }
  0x1a   : > { %396 = vmatpush.msra.mxu0 %v367_v21  ;;  %v356_v34 = vld [vmem:[#allocation2 + $0x8] sm:$0xff]  ;;  %528 = vmatpush.msra.mxu3 %v492_v58  ;;  %v483_v3 = vld [vmem:[%s907_s5 + $0x60] sm:$0xff]  ;;  %v478_v10 = vld [vmem:[%s907_s5 + $0x38] sm:$0xff] }
  0x1b   : > { %427 = vmatpush.msra.mxu1 %v375_v33  ;;  %499 = vmatpush.msra.mxu2 %v485_v1  ;;  %v480_v6 = vld [vmem:[%s907_s5 + $0x48] sm:$0xff]  ;;  %v479_v7 = vld [vmem:[%s907_s5 + $0x40] sm:$0xff]  ;;  %v477_v11 = vld [vmem:[%s907_s5 + $0x30] sm:$0xff] }
  0x1c   : > { %397 = vmatpush.msra.mxu0 %v366_v22  ;;  %625 = vmatmul.msk.f32.vlgmr.msra.gmra.mxu1 %vm328_vm0, %v356_v34  ;;  %v476_v12 = vld [vmem:[%s907_s5 + $0x28] sm:$0xff]  ;;  %v475_v13 = vld [vmem:[%s907_s5 + $0x20] sm:$0xff]  ;;  %v474_v18 = vld [vmem:[%s907_s5 + $0x18] sm:$0xff] }
  0x1d   : > { %529 = vmatpush.msra.mxu3 %v491_v59  ;;  %500 = vmatpush.msra.mxu2 %v484_v2  ;;  %v473_v19 = vld [vmem:[%s907_s5 + $0x10] sm:$0xff]  ;;  %v472_v20 = vld [vmem:[%s907_s5 + $0x8] sm:$0xff]  ;;  %v471_v21 = vld [vmem:[%s907_s5] sm:$0xff] }
  0x1e   : > { %398 = vmatpush.msra.mxu0 %v365_v23 }
  0x1f   : > { %530 = vmatpush.msra.mxu3 %v490_v60  ;;  %501 = vmatpush.msra.mxu2 %v483_v3 }
  0x20   : > { %399 = vmatpush.msra.mxu0 %v364_v24  ;;  %v644_v24 = vld [vmem:[%s908_s6] ss:$0 sm:$0xff] }
  0x21   : > { %531 = vmatpush.msra.mxu3 %v489_v61  ;;  %502 = vmatpush.msra.mxu2 %v482_v4 }
  0x22   : > { %400 = vmatpush.msra.mxu0 %v363_v25 }
  0x23   : > { %532 = vmatpush.msra.mxu3 %v488_v62  ;;  %503 = vmatpush.msra.mxu2 %v481_v5 }
  0x24   : > { %401 = vmatpush.msra.mxu0 %v362_v26  ;;  %626 = vmatmul.msk.f32.gmra.mxu1 %vm328_vm0, %v358_v35 }
  0x25   : > { %533 = vmatpush.msra.mxu3 %v487_v63  ;;  %504 = vmatpush.msra.mxu2 %v480_v6 }
  0x26   : > { %402 = vmatpush.msra.mxu0 %v361_v28  ;;  %v645_v28 = vld [vmem:[%s909_s7] ss:$0 sm:$0xff] }
  0x27   : > { %505 = vmatpush.msra.mxu2 %v479_v7 }
  0x28   : > { %403 = vmatpush.msra.mxu0 %v360_v30 }
  0x29   : > { %506 = vmatpush.msra.mxu2 %v478_v10 }
  0x2a   : > { %404 = vmatpush.msra.mxu0 %v359_v32 }
  0x2b   : > { %507 = vmatpush.msra.mxu2 %v477_v11 }
  0x2d   : > { %508 = vmatpush.msra.mxu2 %v476_v12 }
  0x2f   : > { %509 = vmatpush.msra.mxu2 %v475_v13 }
  0x31   : > { %510 = vmatpush.msra.mxu2 %v474_v18 }
  0x33   : > { %511 = vmatpush.msra.mxu2 %v473_v19 }
  0x35   : > { %512 = vmatpush.msra.mxu2 %v472_v20 }
  0x37   : > { %513 = vmatpush.msra.mxu2 %v471_v21 }
  0x81   : > { %v332_v36 = vpop.permute.xlu0 %331 }
  0x82   : > { %335 = vst.msk [vmem:[#allocation2] sm:$0xff] %vm334_vm2, %v332_v36 }
  0x89   : > { %v346_v37 = vpop.permute.xlu0 %345  ;;  %v355_v38 = vld [vmem:[#allocation2] sm:$0xff] }
  0x8a   : > { %348 = vst.msk [vmem:[#allocation2 + $0x10] sm:$0xff] %vm334_vm2, %v346_v37  ;;  %405 = vmatmul.f32.vlgmr.msra.gmra.mxu0 %v355_v38 }
  0x91   : > { %v357_v39 = vld [vmem:[#allocation2 + $0x10] sm:$0xff] }
  0x92   : > { %408 = vmatmul.f32.gmra.mxu0 %v357_v39 }
  0x99   : > { %v429_v41 = vpop.f32.mrf.mxu1 }
  0xa1   : > { %v432_v45 = vpop.f32.mrf.mxu1 }
 0x107   : > { %v406_v42 = vpop.f32.mrf.mxu0 }
 0x108   : > { %v430_v43 = vadd.f32 %v429_v41, %v406_v42 }
 0x10a   : > { %v439_v46 = vmul.f32 %v642_v44, %v430_v43 }
 0x10c   : > { %v445_v51 = vadd.f32 %v643_v47, %v439_v46 }
 0x10e   : > { %v447_v53 = vmax.f32 %v445_v51, 0.0 }
 0x10f   : > { %v409_v48 = vpop.f32.mrf.mxu0 }
 0x110   : > { %v433_v49 = vadd.f32 %v432_v45, %v409_v48 }
 0x112   : > { %v440_v50 = vmul.f32 %v642_v44, %v433_v49 }
 0x114   : > { %v446_v52 = vadd.f32 %v643_v47, %v440_v50 }
 0x116   : > { %v448_v54 = vmax.f32 %v446_v52, 0.0 }
 0x118   : > { %v449_v55 = vmax.f32 %v447_v53, %v448_v54 }
 0x11a   : > { %451 = vrot.lane.b32.xlu1 %v449_v55, %s654_s12 }
 0x18c   : > { %v452_v8 = vpop.permute.xlu1 %451 }
 0x18d   : > { %v454_v9 = vmax.f32 %v449_v55, %v452_v8 }
 0x18f   : > { %458 = vst.msk [vmem:[#allocation3 + $0x1] sm:$0xff] %vm328_vm0, %v454_v9 }
 0x196   : > { %v461_v14 = vld [vmem:[#allocation3 + $0x1] sm:$0xff] }
 0x197   : > { %v467_v15 = vld [vmem:[#allocation3 + $0x2] sm:$0xff]  ;;  %463 = vrot.lane.b32.xlu1 %v461_v14, %s654_s12 }
 0x198   : > { %v459_v16 = vld [vmem:[#allocation3] sm:$0xff]  ;;  %468 = vst.msk [vmem:[#allocation4 + $0x8] sm:$0xff] %vm328_vm0, %v467_v15 }
 0x199   : > { %460 = vst.msk [vmem:[#allocation4] sm:$0xff] %vm328_vm0, %v459_v16 }
 0x19f   : > { %v470_v17 = vld [vmem:[#allocation4 + $0x8] sm:$0xff] }
 0x1a0   : > { %627 = vmatmul.msk.f32.vlgmr.msra.gmra.mxu3 %vm328_vm0, %v470_v17 }
 0x209   : > { %v464_v22 = vpop.permute.xlu1 %463 }
 0x20a   : > { %466 = vst.msk [vmem:[#allocation4] sm:$0xff] %vm334_vm2, %v464_v22 }
 0x211   : > { %v469_v23 = vld [vmem:[#allocation4] sm:$0xff] }
 0x212   : > { %514 = vmatmul.f32.vlgmr.msra.gmra.mxu2 %v469_v23 }
 0x223   : > { %v535_v25 = vpop.f32.mrf.mxu3 }
 0x295   : > { %v515_v26 = vpop.f32.mrf.mxu2 }
 0x296   : > { %v536_v27 = vadd.f32 %v535_v25, %v515_v26 }
 0x298   : > { %v542_v29 = vmul.f32 %v644_v24, %v536_v27 }
 0x29a   : > { %v547_v30 = vadd.f32 %v645_v28, %v542_v29 }
 0x29c   : > { %v548_v31 = vmax.f32 %v547_v30, 0.0 }
 0x29e   : > { %549 = vst.msk [vmem:[%s323_s25] sm:$0xff] %vm328_vm0, %v548_v31 }
 0x29f PF: > { %s18_s27 = sadd.s32 1, %s652_s27  }
 0x2a0   : > { %p15_p4 = scmp.ge.s32.totalorder %s18_s27, 4  }
 0x2a2   :  { %17 = sbr.rel (!%p15_p4) target bundleno = 1 (0x1), region = 85 }

</bundles_post_ra>
